<compile_context>
chip_gen: v5e
topology: v5e:2x2
jax: 0.10.0
libtpu: 0.0.40
codegen_flags: <defaults>
</compile_context>

<pallas_src>
import functools

import jax
import jax.numpy as jnp
from jax.experimental import pallas as pl
from jax.experimental.pallas import tpu as pltpu

LANE = 128     # TPU lane width (last dim)
SUBLANE = 8    # TPU sublane width for f32 (second-to-last dim)


def _round_up(n, m):
    return (n + m - 1) // m * m


def _cdiv(a, b):
    return -(-a // b)


# --------------------------------------------------------------------------
# Kernel
# --------------------------------------------------------------------------
def _mlp_kernel(*refs, num_linear: int, negative_slope: float):
    """Fused MLP over one (batch_tile, feature) block.

    refs = (x_ref, w0_ref, b0_ref, ..., w{L-1}_ref, b{L-1}_ref, o_ref)
    Hidden feature dims are padded to 128 by prepare_params(); d_in/d_out are
    left at their natural widths (full-array last dims).
    """
    x_ref = refs[0]
    o_ref = refs[-1]
    wb = refs[1:-1]

    h = x_ref[...].astype(jnp.float32)
    for li in range(num_linear):
        w = wb[2 * li][...]
        b = wb[2 * li + 1][...].astype(jnp.float32)
        # Cast the LHS to the weight dtype (no-op for f32, bf16 MXU path for bf16);
        # accumulate in f32, do bias + activation in f32.
        h = jnp.dot(h.astype(w.dtype), w, preferred_element_type=jnp.float32) + b
        if li < num_linear - 1:                       # hidden layers only
            h = jnp.maximum(h, negative_slope * h)    # LeakyReLU (slope in [0,1])
    o_ref[...] = h.astype(o_ref.dtype)


# --------------------------------------------------------------------------
# One-time parameter prep (hoisted out of the forward call)
# --------------------------------------------------------------------------
def prepare_params(params, compute_dtype=jnp.float32):
    """Pad *hidden* feature dims to 128 lanes and cast weights to compute_dtype.

    d_in (first layer fan_in) and d_out (last layer fan_out) stay unpadded.
    Padding is exact: padded input lanes hit zero weight rows, padded output
    lanes get zero bias, and LeakyReLU(0) == 0.  Do this ONCE and reuse.
    """
    n = len(params)
    prepped = []
    for i, (w, b) in enumerate(params):
        fi, fo = w.shape
        fi_p = _round_up(fi, LANE) if i > 0 else fi
        fo_p = _round_up(fo, LANE) if i < n - 1 else fo
        w_p = jnp.zeros((fi_p, fo_p), compute_dtype).at[:fi, :fo].set(
            w.astype(compute_dtype))
        b_p = jnp.zeros((1, fo_p), jnp.float32).at[:, :fo].set(
            b.astype(jnp.float32))
        prepped.append((w_p, b_p))
    return prepped


# --------------------------------------------------------------------------
# Forward pass
# --------------------------------------------------------------------------
def net_forward(prepped_params, x, *, negative_slope: float = 0.01,
                batch_tile: int = 1024, small_batch_no_grid: int = 256):
    """Forward pass of `Net` as a single fused Pallas kernel.

    prepped_params: output of prepare_params() — list of (W [in_p, out_p], b [1, out_p]).
    x:              [batch, input_size].
    """
    batch, d_in = x.shape
    assert d_in == prepped_params[0][0].shape[0]
    d_out = prepped_params[-1][0].shape[1]
    num_linear = len(prepped_params)
    compute_dtype = prepped_params[0][0].dtype
    out_dtype = x.dtype

    x = x.astype(compute_dtype)

    wb = []
    for (w, b) in prepped_params:
        wb.append(w)
        wb.append(b)
    n_inputs = 1 + len(wb)
    weight_bytes = sum(int(a.size) * a.dtype.itemsize for a in wb)
    flops_per_row = 2 * sum(int(w.shape[0]) * int(w.shape[1])
                            for w, _ in prepped_params)

    def _cost(rows):
        return pl.CostEstimate(
            flops=flops_per_row * rows,
            transcendentals=0,
            bytes_accessed=(rows * d_in * jnp.dtype(compute_dtype).itemsize
                            + weight_bytes
                            + rows * d_out * jnp.dtype(out_dtype).itemsize))

    kernel = functools.partial(
        _mlp_kernel, num_linear=num_linear, negative_slope=negative_slope)

    batch_p = _round_up(batch, SUBLANE)

    if batch_p <= small_batch_no_grid:
        # Small batch: no grid at all — every operand is one whole-array VMEM
        # block; no pipelining machinery, minimal fixed overhead.  (Single TC.)
        x_p = x if batch_p == batch else (
            jnp.zeros((batch_p, d_in), x.dtype).at[:batch].set(x))
        out_p = pl.pallas_call(
            kernel,
            out_shape=jax.ShapeDtypeStruct((batch_p, d_out), out_dtype),
            in_specs=[pl.BlockSpec(memory_space=pltpu.MemorySpace.VMEM)] * n_inputs,
            out_specs=pl.BlockSpec(memory_space=pltpu.MemorySpace.VMEM),
            cost_estimate=_cost(batch_p),
        )(x_p, *wb)
    else:
        # Batch-tiled path: "parallel" batch axis (megacore / v7x dual-TC),
        # weights stay resident (constant index_map).  Tile size chosen so
        # there are >= 2 grid steps and the padded tail is bounded by SUBLANE
        # per tile (batch padded to a multiple of tb, NOT of batch_tile).
        n_tiles = max(2, _cdiv(batch_p, batch_tile))
        tb = _round_up(_cdiv(batch_p, n_tiles), SUBLANE)
        n_tiles = max(2, _cdiv(batch_p, tb))
        batch_pp = n_tiles * tb

        x_p = x if batch_pp == batch else (
            jnp.zeros((batch_pp, d_in), x.dtype).at[:batch].set(x))

        in_specs = [pl.BlockSpec((tb, d_in), lambda i: (i, 0))]
        for arr in wb:
            in_specs.append(pl.BlockSpec(arr.shape, lambda i: (0, 0)))

        # VMEM budget: resident weights are double-buffered by default.
        act_width = max(int(w.shape[1]) for w, _ in prepped_params)
        vmem_need = (2 * weight_bytes
                     + 2 * tb * (d_in + d_out) * jnp.dtype(compute_dtype).itemsize
                     + 2 * tb * act_width * 4)
        compiler_kwargs = dict(dimension_semantics=("parallel",))
        if vmem_need > (30 << 20):
            # TODO(synk): for very large hidden/num_layers add a layer-/K-tiled
            # fallback (and single-buffered weight specs) instead of only raising
            # the scoped limit; v7x has 64 MiB physical VMEM.
            compiler_kwargs["vmem_limit_bytes"] = min(int(vmem_need * 1.25), 100 << 20)

        out_p = pl.pallas_call(
            kernel,
            out_shape=jax.ShapeDtypeStruct((batch_pp, d_out), out_dtype),
            grid=(n_tiles,),
            in_specs=in_specs,
            out_specs=pl.BlockSpec((tb, d_out), lambda i: (i, 0)),
            compiler_params=pltpu.CompilerParams(**compiler_kwargs),
            cost_estimate=_cost(batch_pp),
        )(x_p, *wb)

    return out_p[:batch]


# --------------------------------------------------------------------------
# Parameter init (matches the layer shapes of the PyTorch Net) + reference
# --------------------------------------------------------------------------
def init_net_params(key, input_size, output_size, hidden_size, num_layers,
                    dtype=jnp.float32):
    if num_layers == 0:
        dims = [(input_size, output_size)]
    else:
        dims = [(input_size, hidden_size)]
        dims += [(hidden_size, hidden_size)] * (num_layers - 1)
        dims += [(hidden_size, output_size)]
    params = []
    for (fan_in, fan_out) in dims:
        key, kw, kb = jax.random.split(key, 3)
        bound = 1.0 / jnp.sqrt(jnp.asarray(fan_in, dtype=jnp.float32))
        # stored as [in, out] (transpose of PyTorch's [out, in])
        w = jax.random.uniform(kw, (fan_in, fan_out), dtype=dtype,
                               minval=-bound, maxval=bound)
        b = jax.random.uniform(kb, (1, fan_out), dtype=dtype,
                               minval=-bound, maxval=bound)
        params.append((w, b))
    return params


def net_forward_ref(params, x, negative_slope=0.01):
    h = x
    for (w, b) in params[:-1]:
        h = h @ w + b
        h = jnp.where(h >= 0, h, negative_slope * h)
    w, b = params[-1]
    return h @ w + b


if __name__ == "__main__":
    input_size, output_size, hidden_size, num_layers = 16, 8, 32, 2
    batch = 8

    key = jax.random.PRNGKey(0)
    key, kx = jax.random.split(key)
    x = jax.random.normal(kx, (batch, input_size), dtype=jnp.float32)
    params = init_net_params(key, input_size, output_size, hidden_size,
                             num_layers)
    prepped = prepare_params(params)                   # one-time weight prep

    # --- small-batch (no-grid, fully fused) path
    out = jax.block_until_ready(net_forward(prepped, x))
    ref = net_forward_ref(params, x)
    assert out.shape == (batch, output_size)
    assert jnp.allclose(out, ref, atol=1e-5, rtol=1e-5), "mismatch (fused path)"

    # --- num_layers == 0 edge case (single Linear, no activation)
    params0 = init_net_params(jax.random.PRNGKey(1), input_size, output_size,
                              hidden_size, 0)
    prepped0 = prepare_params(params0)
    out0 = jax.block_until_ready(net_forward(prepped0, x))
    ref0 = net_forward_ref(params0, x)
    assert jnp.allclose(out0, ref0, atol=1e-5, rtol=1e-5), "mismatch (L=0 path)"

    # --- batch-tiled ("parallel" grid, >=2 steps, awkward batch size) path
    key, kxb = jax.random.split(key)
    xb = jax.random.normal(kxb, (600, input_size), dtype=jnp.float32)
    outb = jax.block_until_ready(net_forward(prepped, xb, batch_tile=1024))
    refb = net_forward_ref(params, xb)
    assert outb.shape == (600, output_size)
    assert jnp.allclose(outb, refb, atol=1e-5, rtol=1e-5), "mismatch (tiled path)"

    # --- bf16 compute path (v6e/v7x MXU lever): f32 accumulation, f32 epilogue
    prepped_bf16 = prepare_params(params, compute_dtype=jnp.bfloat16)
    outh = jax.block_until_ready(net_forward(prepped_bf16, xb, batch_tile=1024))
    assert outh.shape == (600, output_size)
    assert jnp.allclose(outh, refb, atol=5e-2, rtol=5e-2), "mismatch (bf16 path)"

    print("KERNEL_OK")
</pallas_src>

<mosaic_0001>
module attributes {stable_mosaic.version = 11 : i64} {
  func.func @_mlp_kernel(%arg0: memref<8x16xf32, #tpu.memory_space<vmem>>, %arg1: memref<16x128xf32, #tpu.memory_space<vmem>>, %arg2: memref<1x128xf32, #tpu.memory_space<vmem>>, %arg3: memref<128x128xf32, #tpu.memory_space<vmem>>, %arg4: memref<1x128xf32, #tpu.memory_space<vmem>>, %arg5: memref<128x8xf32, #tpu.memory_space<vmem>>, %arg6: memref<1x8xf32, #tpu.memory_space<vmem>>, %arg7: memref<8x8xf32, #tpu.memory_space<vmem>>) attributes {dimension_semantics = [], scalar_prefetch = 0 : i64, scratch_operands = 0 : i64, tpu.core_type = #tpu.core_type<tc>} {
    %c0 = arith.constant 0 : index
    %c0_0 = arith.constant 0 : index
    %0 = vector.load %arg0[%c0, %c0_0] : memref<8x16xf32, #tpu.memory_space<vmem>>, vector<8x16xf32>
    %c0_1 = arith.constant 0 : index
    %c0_2 = arith.constant 0 : index
    %1 = vector.load %arg1[%c0_1, %c0_2] : memref<16x128xf32, #tpu.memory_space<vmem>>, vector<16x128xf32>
    %c0_3 = arith.constant 0 : index
    %c0_4 = arith.constant 0 : index
    %2 = vector.load %arg2[%c0_3, %c0_4] : memref<1x128xf32, #tpu.memory_space<vmem>>, vector<1x128xf32>
    %cst = arith.constant dense<0.000000e+00> : vector<8x128xf32>
    %3 = tpu.matmul %0, %1, %cst {dimension_numbers = #tpu.dot_dimension_numbers<[1], [0], [0], [1], [0, 0, 1, 1], [], []>} : vector<8x16xf32>, vector<16x128xf32>, vector<8x128xf32> -> vector<8x128xf32>
    %4 = vector.broadcast %2 : vector<1x128xf32> to vector<8x128xf32>
    %5 = arith.addf %3, %4 : vector<8x128xf32>
    %cst_5 = arith.constant 0.00999999977 : f32
    %6 = vector.broadcast %cst_5 : f32 to vector<8x128xf32>
    %7 = arith.mulf %6, %5 : vector<8x128xf32>
    %8 = arith.maximumf %5, %7 : vector<8x128xf32>
    %c0_6 = arith.constant 0 : index
    %c0_7 = arith.constant 0 : index
    %9 = vector.load %arg3[%c0_6, %c0_7] : memref<128x128xf32, #tpu.memory_space<vmem>>, vector<128x128xf32>
    %c0_8 = arith.constant 0 : index
    %c0_9 = arith.constant 0 : index
    %10 = vector.load %arg4[%c0_8, %c0_9] : memref<1x128xf32, #tpu.memory_space<vmem>>, vector<1x128xf32>
    %cst_10 = arith.constant dense<0.000000e+00> : vector<8x128xf32>
    %11 = tpu.matmul %8, %9, %cst_10 {dimension_numbers = #tpu.dot_dimension_numbers<[1], [0], [0], [1], [0, 0, 1, 1], [], []>} : vector<8x128xf32>, vector<128x128xf32>, vector<8x128xf32> -> vector<8x128xf32>
    %12 = vector.broadcast %10 : vector<1x128xf32> to vector<8x128xf32>
    %13 = arith.addf %11, %12 : vector<8x128xf32>
    %cst_11 = arith.constant 0.00999999977 : f32
    %14 = vector.broadcast %cst_11 : f32 to vector<8x128xf32>
    %15 = arith.mulf %14, %13 : vector<8x128xf32>
    %16 = arith.maximumf %13, %15 : vector<8x128xf32>
    %c0_12 = arith.constant 0 : index
    %c0_13 = arith.constant 0 : index
    %17 = vector.load %arg5[%c0_12, %c0_13] : memref<128x8xf32, #tpu.memory_space<vmem>>, vector<128x8xf32>
    %c0_14 = arith.constant 0 : index
    %c0_15 = arith.constant 0 : index
    %18 = vector.load %arg6[%c0_14, %c0_15] : memref<1x8xf32, #tpu.memory_space<vmem>>, vector<1x8xf32>
    %cst_16 = arith.constant dense<0.000000e+00> : vector<8x8xf32>
    %19 = tpu.matmul %16, %17, %cst_16 {dimension_numbers = #tpu.dot_dimension_numbers<[1], [0], [0], [1], [0, 0, 1, 1], [], []>} : vector<8x128xf32>, vector<128x8xf32>, vector<8x8xf32> -> vector<8x8xf32>
    %20 = vector.broadcast %18 : vector<1x8xf32> to vector<8x8xf32>
    %21 = arith.addf %19, %20 : vector<8x8xf32>
    %c0_17 = arith.constant 0 : index
    %c0_18 = arith.constant 0 : index
    %22 = vector.load %arg7[%c0_17, %c0_18] : memref<8x8xf32, #tpu.memory_space<vmem>>, vector<8x8xf32>
    tpu.vector_store %arg7[%c0_17, %c0_18], %21 {strides = array<i32>} : memref<8x8xf32, #tpu.memory_space<vmem>>, vector<8x8xf32>,
    return
  }
}

</mosaic_0001>

<bundles_post_ra>
// kernel: tpu_custom_call.1
= control target key start
LH: loop header
LB: loop body
LE: loop exit
PB: predicated region body
PF: predicated region fallthrough
CT: control target
= control target key end

     0   :  { %12 = vsyncpa [#allocation3], 0  ;;  %s395_s0 = inlined_call_operand.vmem [shape: f32[8,16], index: 0, kind: input, shape index: {}]   ;;  %s396_s1 = inlined_call_operand.hbm [shape: f32[16,128], index: 1, kind: input, shape index: {}]   ;;  %s397_s2 = inlined_call_operand.vmem [shape: f32[1,128], index: 2, kind: input, shape index: {}]   ;;  %s398_s3 = inlined_call_operand.vmem [shape: f32[128,128], index: 3, kind: input, shape index: {}]   ;;  %s399_s4 = inlined_call_operand.vmem [shape: f32[1,128], index: 4, kind: input, shape index: {}]   ;;  %s400_s5 = inlined_call_operand.vmem [shape: f32[128,8], index: 5, kind: input, shape index: {}]   ;;  %s401_s6 = inlined_call_operand.vmem [shape: f32[1,8], index: 6, kind: input, shape index: {}]   ;;  %s402_s7 = inlined_call_operand.hbm [shape: f32[8,8], index: 7, kind: output, shape index: {}]  }
   0x1   :  { %13 = vsyncpa [#allocation4], 0  ;;  %s20_s26 = sshll.u32 %s396_s1, 4  ;;  %s237_s27 = smov [#allocation2]   ;;  %s21_s26 = int_to_ptr.hbm [resolvable:$true] %s20_s26 }
   0x2   :  { %s22_s28 = sshll.u32 %s237_s27, 4  ;;  %s238_s29 = smov 128   ;;  %s23_s28 = int_to_ptr.vmem [resolvable:$true] %s22_s28 }
   0x3   :  { %s239_s30 = smov 8  }
   0x4   :  { %28 = dma.hbm_to_vmem [thread:$0]  %s21_s26, 256, %s23_s28, [#allocation3], %s238_s29, %s238_s29, %s239_s30  }
   0x5   :  { %233 = dma.done.wait [#allocation3], 256  }
   0x6   :  { %234 = vsyncadd [#allocation3], 4294967040  ;;  %v45_v0 = vld [vmem:[#allocation2 + $0x8] sm:$0xff]  ;;  %v44_v1 = vld [vmem:[#allocation2] sm:$0xff]  ;;  %vm50_vm0 = vcmask 130048   ;;  %s240_s25 = smov [#allocation5]  }
   0x7   :  { %68 = vmatpush.msra.mxu0 %v45_v0  ;;  %v43_v2 = vld [vmem:[%s395_s0] sm:$0xff]  ;;  %v91_v3 = vld [vmem:[%s398_s3 + $0x78] sm:$0xff]  ;;  %v90_v4 = vld [vmem:[%s398_s3 + $0x70] sm:$0xff]  ;;  %s165_s26 = sshll.u32 %s240_s25, 4  ;;  %vm158_vm1 = vcmask 64512   ;;  %s166_s26 = int_to_ptr.vmem [resolvable:$true] %s165_s26 }
   0x8   :  { %96 = vmatpush.msra.mxu1 %v91_v3  ;;  %v89_v5 = vld [vmem:[%s398_s3 + $0x68] sm:$0xff]  ;;  %v88_v6 = vld [vmem:[%s398_s3 + $0x60] sm:$0xff]  ;;  %v87_v7 = vld [vmem:[%s398_s3 + $0x58] sm:$0xff] }
   0x9   :  { %69 = vmatpush.msra.mxu0 %v44_v1  ;;  %v86_v8 = vld [vmem:[%s398_s3 + $0x50] sm:$0xff]  ;;  %v85_v9 = vld [vmem:[%s398_s3 + $0x48] sm:$0xff]  ;;  %v84_v10 = vld [vmem:[%s398_s3 + $0x40] sm:$0xff] }
   0xa   :  { %177 = vmatmul.msk.f32.vlgmr.msra.gmra.mxu0 %vm50_vm0, %v43_v2  ;;  %97 = vmatpush.msra.mxu1 %v90_v4  ;;  %v83_v11 = vld [vmem:[%s398_s3 + $0x38] sm:$0xff]  ;;  %v82_v12 = vld [vmem:[%s398_s3 + $0x30] sm:$0xff]  ;;  %v81_v13 = vld [vmem:[%s398_s3 + $0x28] sm:$0xff] }
   0xb   :  { %v80_v14 = vld [vmem:[%s398_s3 + $0x20] sm:$0xff]  ;;  %v79_v15 = vld [vmem:[%s398_s3 + $0x18] sm:$0xff]  ;;  %v78_v16 = vld [vmem:[%s398_s3 + $0x10] sm:$0xff] }
   0xc   :  { %98 = vmatpush.msra.mxu1 %v89_v5  ;;  %v77_v17 = vld [vmem:[%s398_s3 + $0x8] sm:$0xff]  ;;  %v76_v18 = vld [vmem:[%s398_s3] sm:$0xff]  ;;  %v133_v19 = vld [vmem:[%s400_s5 + $0x78] sm:$0xff] }
   0xd   :  { %v132_v20 = vld [vmem:[%s400_s5 + $0x70] sm:$0xff]  ;;  %138 = vmatpush.msra.mxu2 %v133_v19  ;;  %v131_v21 = vld [vmem:[%s400_s5 + $0x68] sm:$0xff]  ;;  %v130_v22 = vld [vmem:[%s400_s5 + $0x60] sm:$0xff] }
   0xe   :  { %99 = vmatpush.msra.mxu1 %v88_v6  ;;  %v129_v23 = vld [vmem:[%s400_s5 + $0x58] sm:$0xff]  ;;  %v128_v24 = vld [vmem:[%s400_s5 + $0x50] sm:$0xff]  ;;  %v127_v25 = vld [vmem:[%s400_s5 + $0x48] sm:$0xff] }
   0xf   :  { %139 = vmatpush.msra.mxu2 %v132_v20  ;;  %v126_v26 = vld [vmem:[%s400_s5 + $0x40] sm:$0xff]  ;;  %v125_v27 = vld [vmem:[%s400_s5 + $0x38] sm:$0xff]  ;;  %v124_v28 = vld [vmem:[%s400_s5 + $0x30] sm:$0xff] }
  0x10   :  { %100 = vmatpush.msra.mxu1 %v87_v7  ;;  %v123_v29 = vld [vmem:[%s400_s5 + $0x28] sm:$0xff]  ;;  %v122_v30 = vld [vmem:[%s400_s5 + $0x20] sm:$0xff]  ;;  %v121_v36 = vld [vmem:[%s400_s5 + $0x18] sm:$0xff] }
  0x11   :  { %140 = vmatpush.msra.mxu2 %v131_v21  ;;  %v182_v31 = vld [vmem:[%s397_s2] ss:$0 sm:$0xff]  ;;  %v120_v37 = vld [vmem:[%s400_s5 + $0x10] sm:$0xff]  ;;  %v119_v38 = vld [vmem:[%s400_s5 + $0x8] sm:$0xff] }
  0x12   :  { %101 = vmatpush.msra.mxu1 %v86_v8  ;;  %v118_v39 = vld [vmem:[%s400_s5] sm:$0xff]  ;;  %s167_s5 = sshll.u32 %s402_s7, 4  ;;  %s168_s5 = int_to_ptr.hbm [resolvable:$true] %s167_s5 }
  0x13   :  { %141 = vmatpush.msra.mxu2 %v130_v22  ;;  %v183_v40 = vld [vmem:[%s399_s4] ss:$0 sm:$0xff] }
  0x14   :  { %102 = vmatpush.msra.mxu1 %v85_v9  ;;  %v184_v45 = vld [vmem:[%s401_s6] ss:$0 sm:$0xff] }
  0x15   :  { %142 = vmatpush.msra.mxu2 %v129_v23 }
  0x16   :  { %103 = vmatpush.msra.mxu1 %v84_v10 }
  0x17   :  { %143 = vmatpush.msra.mxu2 %v128_v24 }
  0x18   :  { %104 = vmatpush.msra.mxu1 %v83_v11 }
  0x19   :  { %144 = vmatpush.msra.mxu2 %v127_v25 }
  0x1a   :  { %105 = vmatpush.msra.mxu1 %v82_v12 }
  0x1b   :  { %145 = vmatpush.msra.mxu2 %v126_v26 }
  0x1c   :  { %106 = vmatpush.msra.mxu1 %v81_v13 }
  0x1d   :  { %146 = vmatpush.msra.mxu2 %v125_v27 }
  0x1e   :  { %107 = vmatpush.msra.mxu1 %v80_v14 }
  0x1f   :  { %147 = vmatpush.msra.mxu2 %v124_v28 }
  0x20   :  { %108 = vmatpush.msra.mxu1 %v79_v15 }
  0x21   :  { %148 = vmatpush.msra.mxu2 %v123_v29 }
  0x22   :  { %109 = vmatpush.msra.mxu1 %v78_v16 }
  0x23   :  { %149 = vmatpush.msra.mxu2 %v122_v30 }
  0x24   :  { %110 = vmatpush.msra.mxu1 %v77_v17 }
  0x25   :  { %150 = vmatpush.msra.mxu2 %v121_v36 }
  0x26   :  { %111 = vmatpush.msra.mxu1 %v76_v18 }
  0x27   :  { %151 = vmatpush.msra.mxu2 %v120_v37 }
  0x29   :  { %152 = vmatpush.msra.mxu2 %v119_v38 }
  0x2b   :  { %153 = vmatpush.msra.mxu2 %v118_v39 }
  0x87   :  { %v71_v32 = vpop.f32.mrf.mxu0 }
  0x88   :  { %v72_v33 = vadd.f32 %v182_v31, %v71_v32 }
  0x8a   :  { %v74_v34 = vmul.f32 0.01, %v72_v33 }
  0x8c   :  { %v75_v35 = vmax.f32 %v72_v33, %v74_v34 }
  0x8e   :  { %112 = vmatmul.f32.vlgmr.msra.gmra.mxu1 %v75_v35 }
 0x10b   :  { %v113_v41 = vpop.f32.mrf.mxu1 }
 0x10c   :  { %v114_v42 = vadd.f32 %v183_v40, %v113_v41 }
 0x10e   :  { %v116_v43 = vmul.f32 0.01, %v114_v42 }
 0x110   :  { %v117_v44 = vmax.f32 %v114_v42, %v116_v43 }
 0x112   :  { %154 = vmatmul.f32.vlgmr.msra.gmra.mxu2 %v117_v44 }
 0x195   :  { %v155_v46 = vpop.f32.mrf.mxu2 }
 0x196   :  { %v156_v47 = vadd.f32 %v184_v45, %v155_v46 }
 0x198   :  { %159 = vst.msk [vmem:[#allocation5] sm:$0xff] %vm158_vm1, %v156_v47 }
 0x199   :  { %170 = dma.vmem_to_hbm [thread:$0]  %s166_s26, 128, %s168_s5, [#allocation4]  }
 0x19a   :  { %235 = dma.done.wait [#allocation4], 128  }
 0x19b   :  { %236 = vsyncadd [#allocation4], 4294967168 }
 0x19c   :  { %175 = vsyncpa [#allocation3], 1 }
 0x19d   :  { %176 = vsyncpa [#allocation4], 1 }

</bundles_post_ra>
